<compile_context>
chip_gen: v5e
topology: v5e:2x2
jax: 0.10.0
libtpu: 0.0.40
codegen_flags: <defaults>
</compile_context>

<pallas_src>
import functools

import jax
import jax.numpy as jnp
from jax import lax
from jax.experimental import pallas as pl
from jax.experimental.pallas import tpu as pltpu


# ---------------------------------------------------------------------------
# generation-aware VMEM budgets
# ---------------------------------------------------------------------------
def _vmem_capacity_bytes():
    """Physical per-core VMEM bytes; conservative fallback if query fails."""
    try:
        info = pltpu.get_tpu_info()
        for name in ("vmem_capacity_bytes", "vmem_size_bytes", "vmem_bytes"):
            v = getattr(info, name, None)
            if v:
                return int(v)
    except Exception:
        pass
    return 64 * 1024 * 1024          # v7x-sized fallback: safe on every generation


def _budgets():
    cap = _vmem_capacity_bytes()
    # Scoped-VMEM limit asked of the compiler:
    #   128 MiB parts (v5e/v6e) -> 80 MiB, 64 MiB parts (v7x) -> 40 MiB.
    vmem_limit = int(min(cap * 5 // 8, 96 * 1024 * 1024))
    pass1_block = vmem_limit // 4    # x double-buffered + tiny (C,128) outputs
    pass2_block = vmem_limit // 6    # x and z both double-buffered + f32 temps
    return vmem_limit, pass1_block, pass2_block


# ---------------------------------------------------------------------------
# tile-size selection
# ---------------------------------------------------------------------------
def _sublane(itemsize):
    return {4: 8, 2: 16, 1: 32}.get(itemsize, 8)


def _round_up(v, m):
    return -(-v // m) * m


def _divisors_mult(total, mult, cap=None):
    """Multiples of `mult` that divide `total`, ascending (optionally capped)."""
    out = []
    hi = total if cap is None else min(total, cap)
    d = mult
    while d <= hi:
        if total % d == 0:
            out.append(d)
        d += mult
    return out


def _fused_fits(n, c_tile, hw_pad, itemsize, vmem_limit):
    """VMEM accounting for the fused kernel: 2x in + 2x out blocks + f32 temps."""
    slab_src = n * c_tile * hw_pad * itemsize
    plane_f32 = c_tile * hw_pad * 4
    need = 4 * slab_src + 6 * plane_f32 + (2 << 20)   # + margin
    return need <= vmem_limit


def _pick_fused_c_tile(c_pad, n, hw_pad, itemsize, vmem_limit, sub):
    cands = _divisors_mult(c_pad, sub)
    fit = [d for d in cands if _fused_fits(n, d, hw_pad, itemsize, vmem_limit)]
    if not fit:
        return None
    # Prefer >=2 channel tiles so v7x megacore can shard the (only) grid axis.
    multi = [d for d in fit if c_pad // d >= 2]
    return max(multi) if multi else max(fit)


def _pick_pass_c_tile(c_pad, sub):
    # Cap at 64 so the strip-loop accumulators stay register/VMEM friendly.
    cands = _divisors_mult(c_pad, sub, cap=64)
    if not cands:
        cands = [c_pad]
    c_tile = max(cands)
    # Megacore (v7x): prefer >=2 channel tiles on the parallel axis.
    if c_pad // c_tile < 2:
        smaller = [d for d in cands if c_pad // d >= 2]
        if smaller:
            c_tile = max(smaller)
    return c_tile


def _pick_pass_hw_tile(hw_pad, c_tile, bytes_per_elem, budget):
    max_lanes = max(128, budget // (c_tile * bytes_per_elem))
    cands = [d for d in _divisors_mult(hw_pad, 128) if d <= max_lanes]
    return max(cands) if cands else 128


# ---------------------------------------------------------------------------
# fused kernel: stats + normalization on one resident (N, c_tile, HW) slab
# ---------------------------------------------------------------------------
def _fused_bn_kernel(x_ref, w_ref, b_ref, z_ref, mean_ref, var_ref, *, inv_m, eps):
    nb, ct, hw = x_ref.shape

    # Per-channel sum / sum-of-squares: VPU adds over the N axis, planes stay
    # in VMEM; a single cross-lane reduce at the end.
    def stat_body(i, carry):
        s, q = carry
        xi = x_ref[i].astype(jnp.float32)                 # (ct, hw)
        return s + xi, q + xi * xi

    s_nh, q_nh = lax.fori_loop(
        0, nb, stat_body,
        (jnp.zeros((ct, hw), jnp.float32), jnp.zeros((ct, hw), jnp.float32)))

    xsum = jnp.sum(s_nh, axis=-1, keepdims=True)          # (ct, 1)
    xsqsum = jnp.sum(q_nh, axis=-1, keepdims=True)        # (ct, 1)

    mean = xsum * inv_m
    var = xsqsum * inv_m - mean * mean                    # biased variance
    mean_ref[...] = mean
    var_ref[...] = var

    inv_std = lax.rsqrt(var + eps)                        # EUP
    scale = w_ref[...] * inv_std                          # (ct, 1)
    shift = b_ref[...] - mean * scale                     # (ct, 1)

    def z_body(i, _):
        xi = x_ref[i].astype(jnp.float32)
        z_ref[i] = (xi * scale + shift).astype(z_ref.dtype)
        return 0

    lax.fori_loop(0, nb, z_body, 0)


# ---------------------------------------------------------------------------
# two-pass fallback, pass 1: per-channel sum / sum-of-squares
#   Lane-strip VPU accumulation directly into (C, 128) resident output blocks
#   (no scratch, no per-step cross-lane XLU reduce).
# ---------------------------------------------------------------------------
def _stats_kernel(x_ref, xsum_ref, xsqsum_ref):
    ni = pl.program_id(1)
    hi = pl.program_id(2)

    @pl.when(jnp.logical_and(ni == 0, hi == 0))
    def _():
        xsum_ref[...] = jnp.zeros_like(xsum_ref)
        xsqsum_ref[...] = jnp.zeros_like(xsqsum_ref)

    ct, hw_tile = x_ref.shape
    n_strips = hw_tile // 128

    def body(i, carry):
        s, q = carry
        off = pl.multiple_of(i * 128, 128)
        xs = x_ref[:, pl.ds(off, 128)].astype(jnp.float32)   # (ct, 128) VPU adds
        return s + xs, q + xs * xs

    unroll = 4 if n_strips % 4 == 0 else (2 if n_strips % 2 == 0 else 1)
    acc_s, acc_q = lax.fori_loop(
        0, n_strips, body,
        (jnp.zeros((ct, 128), jnp.float32), jnp.zeros((ct, 128), jnp.float32)),
        unroll=unroll)

    xsum_ref[...] += acc_s        # output blocks are VMEM-resident across (ni, hi)
    xsqsum_ref[...] += acc_q


# ---------------------------------------------------------------------------
# two-pass fallback, pass 2: z = x * scale[c] + shift[c]  (lane-dense affine)
# ---------------------------------------------------------------------------
def _normalize_kernel(x_ref, scale_ref, shift_ref, z_ref):
    x = x_ref[...].astype(jnp.float32)                    # (ct, hw_tile)
    z_ref[...] = (x * scale_ref[...] + shift_ref[...]).astype(z_ref.dtype)


# ---------------------------------------------------------------------------
# wrapper
# ---------------------------------------------------------------------------
def batchnorm2d_sync_forward(x, weight, bias, running_mean, running_var,
                             momentum=0.1, eps=1e-5, _force_two_pass=False):
    """x: NCHW.  Returns (z_NCHW, new_running_mean, new_running_var)."""
    n, c, h, w = x.shape
    hw = h * w
    m_total = n * hw
    itemsize = jnp.dtype(x.dtype).itemsize
    sub = _sublane(itemsize)

    c_pad = _round_up(c, sub)
    hw_pad = _round_up(hw, 128)

    x3 = x.reshape(n, c, hw)                      # free view of NCHW, no transpose
    if c_pad != c or hw_pad != hw:
        # Zero pad: zeros don't perturb sum/sumsq since we divide by true m_total.
        x3 = jnp.pad(x3, ((0, 0), (0, c_pad - c), (0, hw_pad - hw)))

    if weight is None:
        weight = jnp.ones((c,), jnp.float32)
    if bias is None:
        bias = jnp.zeros((c,), jnp.float32)
    w_p = jnp.pad(weight.astype(jnp.float32), (0, c_pad - c)).reshape(c_pad, 1)
    b_p = jnp.pad(bias.astype(jnp.float32), (0, c_pad - c)).reshape(c_pad, 1)

    vmem_limit, p1_blk, p2_blk = _budgets()

    fused_ct = None
    if not _force_two_pass:
        fused_ct = _pick_fused_c_tile(c_pad, n, hw_pad, itemsize, vmem_limit, sub)

    if fused_ct is not None:
        # ---------------- fused single-read path ----------------------------
        grid = (c_pad // fused_ct,)
        x_spec = pl.BlockSpec((n, fused_ct, hw_pad), lambda ci: (0, ci, 0))
        cvec_spec = pl.BlockSpec((fused_ct, 1), lambda ci: (ci, 0))
        kern = functools.partial(_fused_bn_kernel,
                                 inv_m=float(1.0 / m_total), eps=float(eps))
        z3, mean_p, var_p = pl.pallas_call(
            kern,
            out_shape=(jax.ShapeDtypeStruct((n, c_pad, hw_pad), x.dtype),
                       jax.ShapeDtypeStruct((c_pad, 1), jnp.float32),
                       jax.ShapeDtypeStruct((c_pad, 1), jnp.float32)),
            grid_spec=pltpu.PrefetchScalarGridSpec(
                num_scalar_prefetch=0,
                grid=grid,
                in_specs=[x_spec, cvec_spec, cvec_spec],
                out_specs=(x_spec, cvec_spec, cvec_spec)),
            compiler_params=pltpu.CompilerParams(
                dimension_semantics=("parallel",),
                vmem_limit_bytes=vmem_limit),
        )(x3, w_p, b_p)

        mean = mean_p.reshape(c_pad)[:c]
        var = var_p.reshape(c_pad)[:c]
        # NOTE: for N*H*W == 1 PyTorch's unbiased variance is inf/NaN; we guard.
        uvar = var * (m_total / max(m_total - 1, 1))
    else:
        # ---------------- two-pass streaming fallback ------------------------
        ct = _pick_pass_c_tile(c_pad, sub)
        # NOTE: when c_pad == sub there is only one channel tile, so pass 1 runs
        # on a single TensorCore on v7x (rare: tiny C with huge activations).

        # ---- pass 1: per-channel sum / sum-of-squares ----
        hw1 = _pick_pass_hw_tile(hw_pad, ct, itemsize, p1_blk)
        grid1 = (c_pad // ct, n, hw_pad // hw1)
        x_spec1 = pl.BlockSpec((None, ct, hw1), lambda ci, ni, hi: (ni, ci, hi))
        out_spec1 = pl.BlockSpec((ct, 128), lambda ci, ni, hi: (ci, 0))
        xsum128, xsqsum128 = pl.pallas_call(
            _stats_kernel,
            out_shape=(jax.ShapeDtypeStruct((c_pad, 128), jnp.float32),
                       jax.ShapeDtypeStruct((c_pad, 128), jnp.float32)),
            grid_spec=pltpu.PrefetchScalarGridSpec(
                num_scalar_prefetch=0,
                grid=grid1,
                in_specs=[x_spec1],
                out_specs=(out_spec1, out_spec1)),
            compiler_params=pltpu.CompilerParams(
                dimension_semantics=("parallel", "arbitrary", "arbitrary"),
                vmem_limit_bytes=vmem_limit),
        )(x3)

        # tiny per-channel glue (same formulas as the CUDA syncbn backend)
        xsum_f = jnp.sum(xsum128, axis=-1)                 # (c_pad,)
        xsqsum_f = jnp.sum(xsqsum128, axis=-1)
        mean_f = xsum_f / m_total
        sumvar_f = xsqsum_f - xsum_f * mean_f
        var_f = sumvar_f / m_total
        inv_std_f = lax.rsqrt(var_f + eps)
        scale_f = w_p.reshape(c_pad) * inv_std_f
        shift_f = b_p.reshape(c_pad) - mean_f * scale_f

        mean = mean_f[:c]
        var = var_f[:c]
        uvar = sumvar_f[:c] / max(m_total - 1, 1)

        # ---- pass 2: streamed lane-dense affine ----
        hw2 = _pick_pass_hw_tile(hw_pad, ct, max(itemsize, 4), p2_blk)
        grid2 = (c_pad // ct, n, hw_pad // hw2)
        x_spec2 = pl.BlockSpec((None, ct, hw2), lambda ci, ni, hi: (ni, ci, hi))
        cvec2 = pl.BlockSpec((ct, 1), lambda ci, ni, hi: (ci, 0))
        z3 = pl.pallas_call(
            _normalize_kernel,
            out_shape=jax.ShapeDtypeStruct((n, c_pad, hw_pad), x.dtype),
            grid_spec=pltpu.PrefetchScalarGridSpec(
                num_scalar_prefetch=0,
                grid=grid2,
                in_specs=[x_spec2, cvec2, cvec2],
                out_specs=x_spec2),
            compiler_params=pltpu.CompilerParams(
                dimension_semantics=("parallel", "parallel", "parallel"),
                vmem_limit_bytes=vmem_limit),
        )(x3, scale_f.reshape(c_pad, 1), shift_f.reshape(c_pad, 1))

    if c_pad != c or hw_pad != hw:
        z3 = z3[:, :c, :hw]
    z = z3.reshape(n, c, h, w)

    new_running_mean = ((1.0 - momentum) * running_mean
                        + momentum * mean.astype(running_mean.dtype)
                        ).astype(running_mean.dtype)
    new_running_var = ((1.0 - momentum) * running_var
                       + momentum * uvar.astype(running_var.dtype)
                       ).astype(running_var.dtype)
    return z, new_running_mean, new_running_var


# ---------------------------------------------------------------------------
# self-test
# ---------------------------------------------------------------------------
if __name__ == "__main__":
    key = jax.random.PRNGKey(0)
    k_x, k_w, k_x2, k_w2 = jax.random.split(key, 4)
    momentum, eps = 0.1, 1e-5

    def ref_bn(x, weight, bias, rm, rv):
        mean = jnp.mean(x, axis=(0, 2, 3))
        var = jnp.mean((x - mean[None, :, None, None]) ** 2, axis=(0, 2, 3))
        z = (x - mean[None, :, None, None]) / jnp.sqrt(var[None, :, None, None] + eps)
        z = z * weight[None, :, None, None] + bias[None, :, None, None]
        m = x.shape[0] * x.shape[2] * x.shape[3]
        uvar = var * (m / (m - 1))
        return (z, (1.0 - momentum) * rm + momentum * mean,
                (1.0 - momentum) * rv + momentum * uvar)

    # --- test 1: default (fused single-read) path; C=4 exercises C padding ---
    num_features = 4
    x = jax.random.normal(k_x, (2, num_features, 16, 16), dtype=jnp.float32)
    # Deterministic parameter init matching _BatchNorm.reset_parameters():
    # weight ~ U[0, 1), bias = 0, running_mean = 0, running_var = 1
    weight = jax.random.uniform(k_w, (num_features,), dtype=jnp.float32)
    bias = jnp.zeros((num_features,), dtype=jnp.float32)
    running_mean = jnp.zeros((num_features,), dtype=jnp.float32)
    running_var = jnp.ones((num_features,), dtype=jnp.float32)

    z, new_rm, new_rv = batchnorm2d_sync_forward(
        x, weight, bias, running_mean, running_var, momentum=momentum, eps=eps)
    jax.block_until_ready(z)
    jax.block_until_ready(new_rm)
    jax.block_until_ready(new_rv)

    z_ref, rm_ref, rv_ref = ref_bn(x, weight, bias, running_mean, running_var)
    assert jnp.allclose(z, z_ref, atol=1e-4, rtol=1e-4), "z mismatch (fused path)"
    assert jnp.allclose(new_rm, rm_ref, atol=1e-5, rtol=1e-5), "running_mean mismatch"
    assert jnp.allclose(new_rv, rv_ref, atol=1e-5, rtol=1e-5), "running_var mismatch"

    # --- test 2: force the streamed two-pass fallback path ---
    c2 = 8
    x2 = jax.random.normal(k_x2, (2, c2, 16, 16), dtype=jnp.float32)
    w2 = jax.random.uniform(k_w2, (c2,), dtype=jnp.float32)
    b2 = jnp.zeros((c2,), jnp.float32)
    rm2 = jnp.zeros((c2,), jnp.float32)
    rv2 = jnp.ones((c2,), jnp.float32)

    z2, nrm2, nrv2 = batchnorm2d_sync_forward(
        x2, w2, b2, rm2, rv2, momentum=momentum, eps=eps, _force_two_pass=True)
    jax.block_until_ready(z2)

    z2_ref, rm2_ref, rv2_ref = ref_bn(x2, w2, b2, rm2, rv2)
    assert jnp.allclose(z2, z2_ref, atol=1e-4, rtol=1e-4), "z mismatch (two-pass path)"
    assert jnp.allclose(nrm2, rm2_ref, atol=1e-5, rtol=1e-5), "running_mean mismatch (2p)"
    assert jnp.allclose(nrv2, rv2_ref, atol=1e-5, rtol=1e-5), "running_var mismatch (2p)"

    # TODO(synk): multi-device queue/comm sync of the original module reduces to
    # the single-device path here; autograd backward is not implemented.
    print("KERNEL_OK")
</pallas_src>

<mosaic_0001>
module attributes {stable_mosaic.version = 11 : i64} {
  func.func @_fused_bn_kernel(%arg0: i32, %arg1: memref<2x8x256xf32, #tpu.memory_space<vmem>>, %arg2: memref<8x1xf32, #tpu.memory_space<vmem>>, %arg3: memref<8x1xf32, #tpu.memory_space<vmem>>, %arg4: memref<2x8x256xf32, #tpu.memory_space<vmem>>, %arg5: memref<8x1xf32, #tpu.memory_space<vmem>>, %arg6: memref<8x1xf32, #tpu.memory_space<vmem>>) attributes {dimension_semantics = [#tpu.dimension_semantics<parallel>], iteration_bounds = array<i64: 1>, scalar_prefetch = 0 : i64, scratch_operands = 0 : i64, tpu.core_type = #tpu.core_type<tc>, window_params = [{transform_indices = @transform_0, window_bounds = array<i64: 2, 8, 256>}, {transform_indices = @transform_1, window_bounds = array<i64: 8, 1>}, {transform_indices = @transform_2, window_bounds = array<i64: 8, 1>}, {transform_indices = @transform_3, window_bounds = array<i64: 2, 8, 256>}, {transform_indices = @transform_4, window_bounds = array<i64: 8, 1>}, {transform_indices = @transform_5, window_bounds = array<i64: 8, 1>}]} {
    %cst = arith.constant 0.000000e+00 : f32
    %0 = vector.broadcast %cst : f32 to vector<8x256xf32>
    %cst_0 = arith.constant 0.000000e+00 : f32
    %1 = vector.broadcast %cst_0 : f32 to vector<8x256xf32>
    %c0_i32 = arith.constant 0 : i32
    %c2_i32 = arith.constant 2 : i32
    %2 = arith.addi %c0_i32, %c2_i32 : i32
    %c1_i32 = arith.constant 1 : i32
    %3:2 = scf.for %arg7 = %c0_i32 to %2 step %c1_i32 iter_args(%arg8 = %0, %arg9 = %1) -> (vector<8x256xf32>, vector<8x256xf32>)  : i32 {
      %25 = arith.index_cast %arg7 : i32 to index
      %c0_18 = arith.constant 0 : index
      %c0_19 = arith.constant 0 : index
      %26 = vector.load %arg1[%25, %c0_18, %c0_19] : memref<2x8x256xf32, #tpu.memory_space<vmem>>, vector<1x8x256xf32>
      %27 = vector.shape_cast %26 : vector<1x8x256xf32> to vector<8x256xf32>
      %28 = arith.addf %arg8, %27 : vector<8x256xf32>
      %29 = arith.mulf %27, %27 : vector<8x256xf32>
      %30 = arith.addf %arg9, %29 : vector<8x256xf32>
      scf.yield %28, %30 : vector<8x256xf32>, vector<8x256xf32>
    }
    %c2_i32_1 = arith.constant 2 : i32
    %cst_2 = arith.constant dense<0.000000e+00> : vector<8xf32>
    %4 = vector.multi_reduction <add>, %3#0, %cst_2 [1] : vector<8x256xf32> to vector<8xf32>
    %5 = vector.shape_cast %4 : vector<8xf32> to vector<8x1xf32>
    %cst_3 = arith.constant dense<0.000000e+00> : vector<8xf32>
    %6 = vector.multi_reduction <add>, %3#1, %cst_3 [1] : vector<8x256xf32> to vector<8xf32>
    %7 = vector.shape_cast %6 : vector<8xf32> to vector<8x1xf32>
    %cst_4 = arith.constant 0.001953125 : f32
    %8 = vector.broadcast %cst_4 : f32 to vector<8x1xf32>
    %9 = arith.mulf %5, %8 : vector<8x1xf32>
    %cst_5 = arith.constant 0.001953125 : f32
    %10 = vector.broadcast %cst_5 : f32 to vector<8x1xf32>
    %11 = arith.mulf %7, %10 : vector<8x1xf32>
    %12 = arith.mulf %9, %9 : vector<8x1xf32>
    %13 = arith.subf %11, %12 : vector<8x1xf32>
    %c0 = arith.constant 0 : index
    %c0_6 = arith.constant 0 : index
    %14 = vector.load %arg5[%c0, %c0_6] : memref<8x1xf32, #tpu.memory_space<vmem>>, vector<8x1xf32>
    tpu.vector_store %arg5[%c0, %c0_6], %9 {strides = array<i32>} : memref<8x1xf32, #tpu.memory_space<vmem>>, vector<8x1xf32>,
    %c0_7 = arith.constant 0 : index
    %c0_8 = arith.constant 0 : index
    %15 = vector.load %arg6[%c0_7, %c0_8] : memref<8x1xf32, #tpu.memory_space<vmem>>, vector<8x1xf32>
    tpu.vector_store %arg6[%c0_7, %c0_8], %13 {strides = array<i32>} : memref<8x1xf32, #tpu.memory_space<vmem>>, vector<8x1xf32>,
    %cst_9 = arith.constant 9.99999974E-6 : f32
    %16 = vector.broadcast %cst_9 : f32 to vector<8x1xf32>
    %17 = arith.addf %13, %16 : vector<8x1xf32>
    %18 = math.rsqrt %17 : vector<8x1xf32>
    %c0_10 = arith.constant 0 : index
    %c0_11 = arith.constant 0 : index
    %19 = vector.load %arg2[%c0_10, %c0_11] : memref<8x1xf32, #tpu.memory_space<vmem>>, vector<8x1xf32>
    %20 = arith.mulf %19, %18 : vector<8x1xf32>
    %c0_12 = arith.constant 0 : index
    %c0_13 = arith.constant 0 : index
    %21 = vector.load %arg3[%c0_12, %c0_13] : memref<8x1xf32, #tpu.memory_space<vmem>>, vector<8x1xf32>
    %22 = arith.mulf %9, %20 : vector<8x1xf32>
    %23 = arith.subf %21, %22 : vector<8x1xf32>
    %c0_i32_14 = arith.constant 0 : i32
    %c2_i32_15 = arith.constant 2 : i32
    %24 = arith.addi %c0_i32_14, %c2_i32_15 : i32
    %c1_i32_16 = arith.constant 1 : i32
    scf.for %arg7 = %c0_i32_14 to %24 step %c1_i32_16  : i32 {
      %25 = arith.index_cast %arg7 : i32 to index
      %c0_18 = arith.constant 0 : index
      %c0_19 = arith.constant 0 : index
      %26 = vector.load %arg1[%25, %c0_18, %c0_19] : memref<2x8x256xf32, #tpu.memory_space<vmem>>, vector<1x8x256xf32>
      %27 = vector.shape_cast %26 : vector<1x8x256xf32> to vector<8x256xf32>
      %28 = vector.broadcast %20 : vector<8x1xf32> to vector<8x256xf32>
      %29 = arith.mulf %27, %28 : vector<8x256xf32>
      %30 = vector.broadcast %23 : vector<8x1xf32> to vector<8x256xf32>
      %31 = arith.addf %29, %30 : vector<8x256xf32>
      %32 = arith.index_cast %arg7 : i32 to index
      %c0_20 = arith.constant 0 : index
      %c0_21 = arith.constant 0 : index
      %33 = vector.load %arg4[%32, %c0_20, %c0_21] : memref<2x8x256xf32, #tpu.memory_space<vmem>>, vector<1x8x256xf32>
      %34 = vector.shape_cast %33 : vector<1x8x256xf32> to vector<8x256xf32>
      %35 = vector.shape_cast %31 : vector<8x256xf32> to vector<1x8x256xf32>
      tpu.vector_store %arg4[%32, %c0_20, %c0_21], %35 {strides = array<i32>} : memref<2x8x256xf32, #tpu.memory_space<vmem>>, vector<1x8x256xf32>,
    }
    %c2_i32_17 = arith.constant 2 : i32
    return
  }
  func.func @transform_0(%arg0: i32) -> (i32, i32, i32) {
    %c0_i32 = arith.constant 0 : i32
    %c0_i32_0 = arith.constant 0 : i32
    %c0_i32_1 = arith.constant 0 : i32
    return %c0_i32, %arg0, %c0_i32_0 : i32, i32, i32
  }
  func.func @transform_1(%arg0: i32) -> (i32, i32) {
    %c0_i32 = arith.constant 0 : i32
    %c0_i32_0 = arith.constant 0 : i32
    return %arg0, %c0_i32 : i32, i32
  }
  func.func @transform_2(%arg0: i32) -> (i32, i32) {
    %c0_i32 = arith.constant 0 : i32
    %c0_i32_0 = arith.constant 0 : i32
    return %arg0, %c0_i32 : i32, i32
  }
  func.func @transform_3(%arg0: i32) -> (i32, i32, i32) {
    %c0_i32 = arith.constant 0 : i32
    %c0_i32_0 = arith.constant 0 : i32
    %c0_i32_1 = arith.constant 0 : i32
    return %c0_i32, %arg0, %c0_i32_0 : i32, i32, i32
  }
  func.func @transform_4(%arg0: i32) -> (i32, i32) {
    %c0_i32 = arith.constant 0 : i32
    %c0_i32_0 = arith.constant 0 : i32
    return %arg0, %c0_i32 : i32, i32
  }
  func.func @transform_5(%arg0: i32) -> (i32, i32) {
    %c0_i32 = arith.constant 0 : i32
    %c0_i32_0 = arith.constant 0 : i32
    return %arg0, %c0_i32 : i32, i32
  }
}

</mosaic_0001>

<bundles_post_ra>
// kernel: tpu_custom_call.1
= control target key start
LH: loop header
LB: loop body
LE: loop exit
PB: predicated region body
PF: predicated region fallthrough
CT: control target
= control target key end

     0   :  { %11 = vsyncpa [#allocation3], 0  ;;  %s391_s0 = inlined_call_operand.hbm [shape: f32[2,8,256], index: 0, kind: input, shape index: {}]   ;;  %s392_s1 = inlined_call_operand.vmem [shape: f32[8,1], index: 1, kind: input, shape index: {}]   ;;  %s393_s2 = inlined_call_operand.vmem [shape: f32[8,1], index: 2, kind: input, shape index: {}]   ;;  %s394_s3 = inlined_call_operand.hbm [shape: f32[2,8,256], index: 3, kind: output, shape index: {0}]   ;;  %s395_s4 = inlined_call_operand.vmem [shape: f32[8,1], index: 4, kind: output, shape index: {1}]   ;;  %s396_s5 = inlined_call_operand.vmem [shape: f32[8,1], index: 5, kind: output, shape index: {2}]  }
   0x1   :  { %12 = vsyncpa [#allocation4], 0  ;;  %s17_s20 = sshll.u32 %s391_s0, 4  ;;  %s332_s21 = smov [#allocation2]   ;;  %s18_s20 = int_to_ptr.hbm [resolvable:$true] %s17_s20 }
   0x2   :  { %s19_s22 = sshll.u32 %s332_s21, 4  ;;  %s333_s23 = smov 256   ;;  %s20_s22 = int_to_ptr.vmem [resolvable:$true] %s19_s22 }
   0x3   :  { %s334_s24 = smov 16  }
   0x4   :  { %25 = dma.hbm_to_vmem [thread:$0]  %s18_s20, 512, %s20_s22, [#allocation3], %s333_s23, %s333_s23, %s334_s24  }
   0x5   :  { %304 = dma.done.wait [#allocation3], 512  }
   0x6   :  { %305 = vsyncadd [#allocation3], 4294966784  ;;  %v308_v0 = vmov 0.0   ;;  %v312_v1 = vmov 0.0   ;;  %v316_v2 = vmov 0.0   ;;  %v320_v3 = vmov 0.0  }
   0x7   :  { %s324_s25 = smov 0  }
   0x8 LB: > { %s173_s0 = sshll.u32 %s326_s25, 4  ;;  %s39_s25 = sadd.s32 1, %s326_s25   ;;  %s326_s25 = sphi %s324_s25, %s39_s25   ;;  %v322_v3 = vphi %v320_v3, %v321_v3   ;;  %v318_v2 = vphi %v316_v2, %v317_v2   ;;  %v314_v1 = vphi %v312_v1, %v313_v1   ;;  %v310_v0 = vphi %v308_v0, %v309_v0  }
   0x9   : > { %s46_s26 = scalar_lea.vmem [#allocation2], %s173_s0  ;;  %p36_p0 = scmp.ge.s32.totalorder %s39_s25, 2  }
   0xa   : > { %v47_v4 = vld [vmem:[%s46_s26] sm:$0xff]  ;;  %v48_v5 = vld [vmem:[%s46_s26 + $0x8] sm:$0xff]  ;;  %vm65_vm0 = vcmask (%p36_p0), 7168  }
   0xb   : > { %v49_v6 = vadd.f32 %v322_v3, %v47_v4   ;;  %v50_v7 = vadd.f32 %v318_v2, %v48_v5   ;;  %v51_v8 = vmul.f32 %v47_v4, %v47_v4  ;;  %v52_v9 = vmul.f32 %v48_v5, %v48_v5  ;;  %38 = sbr.rel (!%p36_p0) target bundleno = 8 (0x8), region = 69  ;;  %v79_v26 = vld [vmem:[%s392_s1] sm:$0xff] (%p36_p0) }
   0xc   :  { %v81_v30 = vld [vmem:[%s393_s2] sm:$0xff] (%p36_p0) }
   0xd   : > { %v53_v10 = vadd.f32 %v314_v1, %v51_v8   ;;  %v54_v11 = vadd.f32 %v310_v0, %v52_v9   ;;  %v317_v2 = vmov %v50_v7   ;;  %v321_v3 = vmov %v49_v6  }
   0xe   :  { %v55_v12 = vadd.f32 (%p36_p0), %v50_v7, %v49_v6 }
   0xf   : > { %v309_v0 = vmov %v54_v11   ;;  %v313_v1 = vmov %v53_v10   ;;  %v58_v13 = vadd.f32 (%p36_p0), %v54_v11, %v53_v10 }
  0x10   :  { %56 = vadd.xlane.f32.xlu0 %v55_v12 }
  0x18   :  { %59 = vadd.xlane.f32.xlu0 %v58_v13 }
  0x83   :  { %v57_v14 = vpop.xlane.xlu0 %56 }
  0x84   :  { %v61_v15 = vmul.f32 0.001953125, %v57_v14 }
  0x86   :  { %66 = vst.msk [vmem:[%s395_s4] sm:$0xff] %vm65_vm0, %v61_v15  ;;  %v63_v17 = vmul.f32 %v61_v15, %v61_v15 }
  0x8b   :  { %v60_v16 = vpop.xlane.xlu0 %59 }
  0x8c   :  { %v62_v18 = vmul.f32 0.001953125, %v60_v16 }
  0x8e   :  { %v64_v19 = vsub.f32 %v62_v18, %v63_v17 }
  0x90   :  { %67 = vst.msk [vmem:[%s396_s5] sm:$0xff] %vm65_vm0, %v64_v19  ;;  %v68_v20 = vadd.f32 1e-05, %v64_v19  ;;  %s328_s5 = smov 0  }
  0x92   :  { %229 = vrsqrt.f32 %v68_v20  ;;  %vm75_vm2 = vweird.f32 %v68_v20 }
  0x98   :  { %v230_v21 = vpop.eup %229 }
  0x99   :  { %v70_v22 = vmul.f32 %v230_v21, %v68_v20  ;;  %vm76_vm1 = vweird.f32 %v230_v21 }
  0x9a   :  { %vm77_vm3 = vmor %vm75_vm2, %vm76_vm1 }
  0x9b   :  { %v71_v23 = vmul.f32 %v230_v21, %v70_v22 }
  0x9d   :  { %v72_v24 = vmul.f32 0.5, %v71_v23 }
  0x9f   :  { %v73_v25 = vsub.f32 1.5, %v72_v24 }
  0xa1   :  { %v74_v27 = vmul.f32 %v230_v21, %v73_v25 }
  0xa3   :  { %v78_v28 = vsel %vm77_vm3, %v230_v21, %v74_v27 }
  0xa4   :  { %v80_v29 = vmul.f32 %v79_v26, %v78_v28 }
  0xa6   :  { %v82_v31 = vmul.f32 %v80_v29, %v61_v15 }
  0xa8   :  { %v83_v32 = vsub.f32 %v81_v30, %v82_v31 }
  0xa9 LB: > { %v335_v33 = vmov 0   ;;  %s174_s1 = sshll.u32 %s330_s5, 4  ;;  %s89_s5 = sadd.s32 1, %s330_s5   ;;  %s330_s5 = sphi %s328_s5, %s89_s5  }
  0xaa   : > { %231 = vset.pattern.permute.xlu0 %v335_v33  ;;  %s92_s9 = scalar_lea.vmem [#allocation2], %s174_s1  ;;  %s110_s2 = scalar_lea.vmem [#allocation5], %s174_s1 }
  0xab   : > { %97 = vperm.xlu0 %231, %v80_v29   ;;  %v93_v35 = vld [vmem:[%s92_s9] sm:$0xff]  ;;  %v94_v36 = vld [vmem:[%s92_s9 + $0x8] sm:$0xff]  ;;  %p86_p1 = scmp.ge.s32.totalorder %s89_s5, 2  }
  0xac   :  { %s119_s12 = sshll.u32 (%p86_p1), %s394_s3, 4  ;;  %s336_s13 = smov (%p86_p1), [#allocation5]   ;;  %s120_s12 = int_to_ptr.hbm [resolvable:$true] %s119_s12 }
  0xad   :  { %s117_s14 = sshll.u32 (%p86_p1), %s336_s13, 4  ;;  %s118_s14 = int_to_ptr.vmem [resolvable:$true] %s117_s14 }
  0xb3   : > { %104 = vperm.xlu0 %231, %v83_v32  }
 0x11d   : > { %v98_v34 = vpop.permute.xlu0 %97 }
 0x11e   : > { %v100_v37 = vmul.f32 %v98_v34, %v93_v35  ;;  %v101_v38 = vmul.f32 %v98_v34, %v94_v36 }
 0x125   : > { %v105_v39 = vpop.permute.xlu0 %104  ;;  %88 = sbr.rel (!%p86_p1) target bundleno = 169 (0xa9), region = 80 }
 0x126   : > { %v107_v40 = vadd.f32 %v105_v39, %v100_v37  ;;  %v108_v41 = vadd.f32 %v105_v39, %v101_v38 }
 0x128   : > { %111 = vst [vmem:[%s110_s2] sm:$0xff] %v107_v40 }
 0x129   : > { %112 = vst [vmem:[%s110_s2 + $0x8] sm:$0xff] %v108_v41 }
 0x12a   :  { %125 = dma.vmem_to_hbm [thread:$0]  %s118_s14, 512, %s120_s12, [#allocation4], %s333_s23, %s333_s23, %s334_s24  }
 0x12b   :  { %306 = dma.done.wait [#allocation4], 512  }
 0x12c   :  { %307 = vsyncadd [#allocation4], 4294966784 }
 0x12d   :  { %138 = vsyncpa [#allocation3], 1 }
 0x12e   :  { %139 = vsyncpa [#allocation4], 1 }

</bundles_post_ra>
